<compile_context>
chip_gen: v7x
topology: tpu7x:2x2x1
jax: 0.10.0
libtpu: 0.0.40
codegen_flags: <defaults>
</compile_context>

<pallas_src>
import numpy as np
import jax
import jax.numpy as jnp
from jax import lax
from jax.experimental import pallas as pl
from jax.experimental.pallas import tpu as pltpu


# ---------------------------------------------------------------------------
# Static index-map construction (plain Python — all shapes are static).
# ---------------------------------------------------------------------------
def _round_up(v, m):
    return ((v + m - 1) // m) * m


def _pad_amounts(target, upsampled):
    """Replicates the PyTorch module's padding logic (its `% 2 is 0.0` branch is
    always False, so only the truncate-toward-zero else branch is live)."""
    before = 0
    after = 0
    if target != upsampled:
        diff = target - upsampled
        before = int(diff / 2)
        after = int(diff - before)
    return before, after


def _upsample_reflect_src_indices(out_size, in_size, pad_before):
    """For each output index along one axis: source index in the ORIGINAL
    (pre-upsample) x2, combining nearest-x2 upsample and reflection padding."""
    up_size = in_size * 2
    idxs = []
    for i in range(out_size):
        u = i - pad_before
        if u < 0:
            u = -u                      # ReflectionPad2d (no border repeat)
        if u >= up_size:
            u = 2 * (up_size - 1) - u
        idxs.append(u // 2)             # nearest upsample: up[i] = in[i // 2]
    return idxs


def _build_selection(row_src, col_src, H2, W2, L_pad):
    """(H2*W2, L_pad) 0/1 matrix so that x_flat @ M[:, :L] == pad(upsample(x))_flat.
    Columns [L, L_pad) are zero padding for a lane-dense output."""
    K = H2 * W2
    rs = np.asarray(row_src, dtype=np.int64)
    cs = np.asarray(col_src, dtype=np.int64)
    L = rs.size * cs.size
    m = np.zeros((K, L_pad), dtype=np.float32)
    src = (rs[:, None] * W2 + cs[None, :]).ravel()        # (L,)
    m[src, np.arange(L)] = 1.0                             # one 1 per real column
    return m


def _tpu_vmem_and_cores():
    """Best-effort hardware query. Falls back to conservative assumptions."""
    vmem_cap = 64 * 1024 * 1024          # conservative default (v7x per-TC VMEM)
    try:
        info = pltpu.get_tpu_info()
        for attr in ("vmem_capacity_bytes", "vmem_bytes", "vmem_size_bytes"):
            v = getattr(info, attr, None)
            if v:
                vmem_cap = int(v)
                break
    except Exception:
        pass
    # Heuristic: 64 MiB per-TC VMEM => v7x (2 TensorCores/chip); 128 MiB => v5e/v6e (1 TC).
    num_tc = 2 if vmem_cap <= 64 * 1024 * 1024 else 1
    return vmem_cap, num_tc


# ---------------------------------------------------------------------------
# Pallas kernel: one batched selection matmul per NC tile.
# ---------------------------------------------------------------------------
def _upsample_pad_kernel(x_ref, sel_ref, o_ref):
    x = x_ref[...]                                # (nc_tile, H2*W2)
    if x.dtype != sel_ref.dtype:                  # static (trace-time) branch
        x = x.astype(sel_ref.dtype)
    # 0/1 selection matmul — exact: every output element equals one input element.
    # precision=HIGHEST keeps f32 inputs bit-exact (no single-pass bf16 demotion).
    out = jnp.dot(x, sel_ref[...],
                  preferred_element_type=jnp.float32,
                  precision=lax.Precision.HIGHEST)
    o_ref[...] = out.astype(o_ref.dtype)          # lane-dense (last dim = L_pad)


def upsample_reshape_eval(x1, x2):
    """Pallas implementation of UpsampleReshape_eval.forward(x1, x2)."""
    N, C, H1, W1 = x1.shape
    N2, C2, H2, W2 = x2.shape
    assert (N, C) == (N2, C2)

    H_up, W_up = 2 * H2, 2 * W2
    top, _bot = _pad_amounts(H1, H_up)
    left, _right = _pad_amounts(W1, W_up)
    H_out, W_out = H1, W1                         # output always matches x1 spatially

    row_src = _upsample_reflect_src_indices(H_out, H2, top)
    col_src = _upsample_reflect_src_indices(W_out, W2, left)

    K = H2 * W2
    L = H_out * W_out
    L_pad = _round_up(L, 128)                     # lane-dense output width

    if jnp.issubdtype(x2.dtype, jnp.floating):
        compute_dtype = x2.dtype
    else:
        # TODO(synk): integer inputs go through an f32 matmul; exact only for |x| < 2^24.
        compute_dtype = jnp.float32

    sel = jnp.asarray(_build_selection(row_src, col_src, H2, W2, L_pad),
                      dtype=compute_dtype)        # (K, L_pad), 0/1

    NC = N * C
    x2_flat = x2.reshape(NC, K)

    # --- NC tile sizing against the real (lane-padded) VMEM footprint -------
    io_itemsize = np.dtype(x2.dtype).itemsize
    sel_itemsize = np.dtype(compute_dtype).itemsize
    sub_mult = {1: 32, 2: 16}.get(io_itemsize, 8)          # dtype sublane packing
    K_pad = _round_up(K, 128)

    vmem_cap, num_tc = _tpu_vmem_and_cores()
    if vmem_cap >= 128 * 1024 * 1024:             # v5e / v6e: plenty of VMEM
        vmem_limit = 96 * 1024 * 1024
        data_budget = 64 * 1024 * 1024
    else:                                          # v7x: 64 MiB physical, stay conservative
        vmem_limit = 32 * 1024 * 1024
        data_budget = 24 * 1024 * 1024

    sel_bytes = _round_up(K, sub_mult) * L_pad * sel_itemsize       # single-buffered SEL
    min_rows_bytes = 2 * sub_mult * (K_pad + L_pad) * io_itemsize
    avail = max(data_budget - sel_bytes, min_rows_bytes)
    bytes_per_row = 2 * (K_pad + L_pad) * io_itemsize               # double-buffered in+out
    max_rows = max(sub_mult, (avail // bytes_per_row) // sub_mult * sub_mult)

    if num_tc >= 2 and NC >= 2 * sub_mult:
        # v7x megacore: keep >= 2 grid steps so both TensorCores get work.
        nc_tile = min(max_rows, _round_up(pl.cdiv(NC, 2), sub_mult))
    else:
        # single TC (v5e/v6e) or tiny NC: take the biggest tile that fits.
        nc_tile = NC if NC <= max_rows else max_rows
    grid = (pl.cdiv(NC, nc_tile),)

    cost = pl.CostEstimate(
        flops=2 * NC * K * L_pad,
        transcendentals=0,
        bytes_accessed=(NC * (K + L_pad)) * io_itemsize + K * L_pad * sel_itemsize,
    )

    # SEL's block index is constant -> fetched once; single buffer is enough.
    try:
        sel_spec = pl.BlockSpec((K, L_pad), lambda i: (0, 0),
                                pipeline_mode=pl.Buffered(1))
    except TypeError:
        sel_spec = pl.BlockSpec((K, L_pad), lambda i: (0, 0))

    out_flat = pl.pallas_call(
        _upsample_pad_kernel,
        out_shape=jax.ShapeDtypeStruct((NC, L_pad), x2.dtype),
        grid_spec=pltpu.PrefetchScalarGridSpec(
            num_scalar_prefetch=0,
            grid=grid,
            in_specs=[
                pl.BlockSpec((nc_tile, K), lambda i: (i, 0)),
                sel_spec,
            ],
            out_specs=pl.BlockSpec((nc_tile, L_pad), lambda i: (i, 0)),
        ),
        compiler_params=pltpu.CompilerParams(
            dimension_semantics=("parallel",),
            vmem_limit_bytes=vmem_limit,
        ),
        cost_estimate=cost,
    )(x2_flat, sel)

    if L_pad != L:
        out_flat = out_flat[:, :L]                # strip lane padding (wrapper-side)
    return out_flat.reshape(N, C, H_out, W_out)


# ---------------------------------------------------------------------------
# Pure-JAX reference for verification.
# ---------------------------------------------------------------------------
def _reference(x1, x2):
    N, C, H1, W1 = x1.shape
    _, _, H2, W2 = x2.shape
    up = jnp.repeat(jnp.repeat(x2, 2, axis=2), 2, axis=3)         # nearest x2
    top, bot = _pad_amounts(H1, 2 * H2)
    left, right = _pad_amounts(W1, 2 * W2)
    return jnp.pad(up, ((0, 0), (0, 0), (top, bot), (left, right)), mode="reflect")


if __name__ == "__main__":
    key = jax.random.PRNGKey(0)
    k1, k2 = jax.random.split(key)
    # x1 sets the target spatial size; x2 gets 2x-upsampled then reflection-padded.
    x1 = jax.random.normal(k1, (2, 4, 16, 16), dtype=jnp.float32)
    x2 = jax.random.normal(k2, (2, 4, 7, 7), dtype=jnp.float32)   # up -> 14x14, pad 1 each side -> 16x16

    out = jax.block_until_ready(upsample_reshape_eval(x1, x2))

    ref = _reference(x1, x2)
    assert out.shape == ref.shape == (2, 4, 16, 16)
    np.testing.assert_allclose(np.asarray(out), np.asarray(ref), rtol=0, atol=0)

    print("KERNEL_OK")
</pallas_src>

<mosaic_0001>
module attributes {stable_mosaic.version = 11 : i64} {
  func.func @_upsample_pad_kernel(%arg0: i32, %arg1: memref<8x49xf32, #tpu.memory_space<vmem>>, %arg2: memref<49x256xf32, #tpu.memory_space<vmem>>, %arg3: memref<8x256xf32, #tpu.memory_space<vmem>>) attributes {dimension_semantics = [#tpu.dimension_semantics<parallel>], iteration_bounds = array<i64: 1>, scalar_prefetch = 0 : i64, scratch_operands = 0 : i64, tpu.core_type = #tpu.core_type<tc>, window_params = [{transform_indices = @transform_0, window_bounds = array<i64: 8, 49>}, {pipeline_mode = #tpu.pipeline_mode<synchronous>, transform_indices = @transform_1, window_bounds = array<i64: 49, 256>}, {transform_indices = @transform_2, window_bounds = array<i64: 8, 256>}]} {
    %c0 = arith.constant 0 : index
    %c0_0 = arith.constant 0 : index
    %0 = vector.load %arg1[%c0, %c0_0] : memref<8x49xf32, #tpu.memory_space<vmem>>, vector<8x49xf32>
    %c0_1 = arith.constant 0 : index
    %c0_2 = arith.constant 0 : index
    %1 = vector.load %arg2[%c0_1, %c0_2] : memref<49x256xf32, #tpu.memory_space<vmem>>, vector<49x256xf32>
    %cst = arith.constant dense<0.000000e+00> : vector<8x256xf32>
    %2 = tpu.matmul %0, %1, %cst {dimension_numbers = #tpu.dot_dimension_numbers<[1], [0], [0], [1], [0, 0, 1, 1], [], []>, precision = #tpu.contract_precision<fp32>} : vector<8x49xf32>, vector<49x256xf32>, vector<8x256xf32> -> vector<8x256xf32>
    %c0_3 = arith.constant 0 : index
    %c0_4 = arith.constant 0 : index
    %3 = vector.load %arg3[%c0_3, %c0_4] : memref<8x256xf32, #tpu.memory_space<vmem>>, vector<8x256xf32>
    tpu.vector_store %arg3[%c0_3, %c0_4], %2 {strides = array<i32>} : memref<8x256xf32, #tpu.memory_space<vmem>>, vector<8x256xf32>,
    return
  }
  func.func @transform_0(%arg0: i32) -> (i32, i32) {
    %c0_i32 = arith.constant 0 : i32
    %c0_i32_0 = arith.constant 0 : i32
    return %arg0, %c0_i32 : i32, i32
  }
  func.func @transform_1(%arg0: i32) -> (i32, i32) {
    %c0_i32 = arith.constant 0 : i32
    %c0_i32_0 = arith.constant 0 : i32
    %c0_i32_1 = arith.constant 0 : i32
    return %c0_i32, %c0_i32_0 : i32, i32
  }
  func.func @transform_2(%arg0: i32) -> (i32, i32) {
    %c0_i32 = arith.constant 0 : i32
    %c0_i32_0 = arith.constant 0 : i32
    return %arg0, %c0_i32 : i32, i32
  }
}

</mosaic_0001>

<bundles_post_ra>
// kernel: tpu_custom_call.1
= control target key start
LH: loop header
LB: loop body
LE: loop exit
PB: predicated region body
PF: predicated region fallthrough
CT: control target
= control target key end

     0   :  { %7 = vsyncpa [#allocation3], 0  ;;  %s1057_s0 = inlined_call_operand.hbm [shape: f32[8,49], index: 0, kind: input, shape index: {}]   ;;  %s1058_s1 = inlined_call_operand.hbm [shape: f32[49,256], index: 1, kind: input, shape index: {}]   ;;  %s1059_s2 = inlined_call_operand.hbm [shape: f32[8,256], index: 2, kind: output, shape index: {}]  }
   0x1   :  { %8 = vsyncpa [#allocation6], 0 }
   0x2   :  { %9 = vsyncpa [#allocation4], 0  ;;  %s863_s9 = smov [#allocation2]   ;;  %s864_s11 = smov [#allocation5]  }
   0x3   :  { %s16_s10 = sshll.u32 %s863_s9, 4  ;;  %s25_s12 = sshll.u32 %s864_s11, 4  ;;  %s17_s10 = int_to_ptr.vmem [resolvable:$true] %s16_s10  ;;  %s884_s12 = int_to_ptr.vmem [resolvable:$true] %s25_s12 }
   0x4   :  { %s791_s15 = scalar_lea.hbm %s1057_s0, 128 }
   0x5   :  { %p792_p0 = scmp.ne.s32.totalorder %s1057_s0, %s791_s15  ;;  %p795_p1 = scmp.lt.u32.totalorder %s791_s15, %s1057_s0 }
   0x7   :  { %p797_p2 = pnand %p795_p1, %p792_p0 }
   0x9   :  { %800 = shalt.err (!%p797_p2)
}
   0xa   :  { %s801_s20 = scalar_lea.vmem %s17_s10, 128  ;;  %p806_p4 = scmp.lt.s32.totalorder %s17_s10, %s17_s10 }
   0xb   :  { %p802_p3 = scmp.ne.s32.totalorder %s17_s10, %s801_s20  ;;  %p807_p5 = scmp.lt.s32.totalorder %s801_s20, %s801_s20 }
   0xd   :  { %p808_p6 = por %p807_p5, %p806_p4 }
   0xf   :  { %p809_p7 = pnand %p808_p6, %p802_p3 }
  0x11   :  { %812 = shalt.err (!%p809_p7)
}
  0x12   :  { %19 = dma.hbm_to_vmem [thread:$0]  %s1057_s0, 128, %s17_s10, [#allocation3]  }
  0x13   :  { %s813_s25 = scalar_lea.hbm %s1058_s1, 1792 }
  0x14   :  { %p814_p8 = scmp.ne.s32.totalorder %s1058_s1, %s813_s25  ;;  %p817_p9 = scmp.lt.u32.totalorder %s813_s25, %s1058_s1 }
  0x16   :  { %p819_p10 = pnand %p817_p9, %p814_p8 }
  0x18   :  { %822 = shalt.err (!%p819_p10)
}
  0x19   :  { %s823_s30 = scalar_lea.vmem %s884_s12, 1792  ;;  %p828_p12 = scmp.lt.s32.totalorder %s884_s12, %s884_s12 }
  0x1a   :  { %p824_p11 = scmp.ne.s32.totalorder %s884_s12, %s823_s30  ;;  %p829_p13 = scmp.lt.s32.totalorder %s823_s30, %s823_s30 }
  0x1c   :  { %p830_p0 = por %p829_p13, %p828_p12 }
  0x1e   :  { %p831_p1 = pnand %p830_p0, %p824_p11 }
  0x20   :  { %834 = shalt.err (!%p831_p1)
}
  0x21   :  { %s865_s0 = smov 256   ;;  %s866_s3 = smov 16  }
  0x22   :  { %31 = dma.hbm_to_vmem [thread:$0]  %s1058_s1, 1792, %s884_s12, [#allocation6], %s865_s0, %s865_s0, %s866_s3  }
  0x23   :  { %857 = dma.done.wait [#allocation3], 128  }
  0x24   :  { %858 = vsyncadd [#allocation3], 4294967168 }
  0x25   :  { %859 = dma.done.wait [#allocation6], 1792  }
  0x26   :  { %860 = vsyncadd [#allocation6], 4294965504  ;;  %v867_v0 = vmov 0.0   ;;  %v40_v1 = vld [vmem:[#allocation5 + $0x8] sm:$0xff]  ;;  %v42_v2 = vld [vmem:[#allocation5 + $0x18] sm:$0xff]  ;;  %vm57_vm0 = vcmask 1040384  }
  0x27   :  { %142 = vmatprep.mubr.f32.mxu1 %v867_v0  ;;  %475 = vmatprep.mubr.f32.mxu0 %v867_v0  ;;  %v39_v3 = vld [vmem:[#allocation5] sm:$0xff]  ;;  %v64_v4 = vand.u32 4294901760, %v40_v1  ;;  %v68_v5 = vand.u32 4294901760, %v42_v2  ;;  %v41_v6 = vld [vmem:[#allocation5 + $0x10] sm:$0xff]  ;;  %v44_v8 = vld [vmem:[#allocation5 + $0x28] sm:$0xff]  ;;  %vm53_vm1 = vcmask 400384  }
  0x28   :  { %v66_v7 = vand.u32 4294901760, %v39_v3  ;;  %v46_v9 = vld [vmem:[#allocation5 + $0x38] sm:$0xff]  ;;  %v70_v10 = vand.u32 4294901760, %v41_v6  ;;  %v72_v11 = vand.u32 4294901760, %v44_v8  ;;  %v43_v13 = vld [vmem:[#allocation5 + $0x20] sm:$0xff]  ;;  %v45_v14 = vld [vmem:[#allocation5 + $0x30] sm:$0xff] }
  0x29   :  { %v76_v12 = vand.u32 4294901760, %v46_v9  ;;  %v48_v15 = vld [vmem:[#allocation5 + $0x48] sm:$0xff]  ;;  %v917_v16 = vpack.c.bf16 %v68_v5, %v64_v4  ;;  %v919_v17 = vsub.f32 %v40_v1, %v64_v4  ;;  %v921_v18 = vsub.f32 %v42_v2, %v68_v5  ;;  %v50_v20 = vld [vmem:[#allocation5 + $0x58] sm:$0xff]  ;;  %v47_v21 = vld [vmem:[#allocation5 + $0x40] sm:$0xff]  ;;  %s868_s1 = smov [#allocation7]  }
  0x2a   :  { %v923_v19 = vsub.f32 %v39_v3, %v66_v7  ;;  %v49_v22 = vld [vmem:[#allocation5 + $0x50] sm:$0xff]  ;;  %v925_v23 = vpack.c.bf16 %v70_v10, %v66_v7  ;;  %v927_v24 = vsub.f32 %v41_v6, %v70_v10  ;;  %v931_v26 = vsub.f32 %v44_v8, %v72_v11  ;;  %v52_v27 = vld [vmem:[#allocation5 + $0x68] sm:$0x1]  ;;  %v51_v36 = vld [vmem:[#allocation5 + $0x60] sm:$0x1]  ;;  %s693_s6 = sshll.u32 %s868_s1, 4  ;;  %s694_s6 = int_to_ptr.vmem [resolvable:$true] %s693_s6 }
  0x2b   :  { %v929_v25 = vpack.c.bf16 %v76_v12, %v72_v11  ;;  %704 = vmatprep.subr.bf16.mxu1 %v917_v16  ;;  %740 = vmatprep.subr.bf16.mxu0 %v917_v16  ;;  %v935_v28 = vsub.f32 %v46_v9, %v76_v12  ;;  %v74_v29 = vand.u32 4294901760, %v43_v13  ;;  %v78_v30 = vand.u32 4294901760, %v45_v14  ;;  %v38_v40 = vld [vmem:[#allocation2] sm:$0xff]  ;;  %s835_s7 = scalar_lea.vmem %s694_s6, 256  ;;  %p840_p3 = scmp.lt.s32.totalorder %s694_s6, %s694_s6 }
  0x2c   :  { %v80_v31 = vand.u32 4294901760, %v48_v15  ;;  %706 = vmatpush1.bf16.msra.mxu1 %v925_v23  ;;  %742 = vmatpush1.bf16.msra.mxu0 %v925_v23  ;;  %v84_v32 = vand.u32 4294901760, %v50_v20  ;;  %v82_v33 = vand.u32 4294901760, %v47_v21  ;;  %v86_v34 = vand.u32 4294901760, %v49_v22  ;;  %p836_p2 = scmp.ne.s32.totalorder %s694_s6, %s835_s7  ;;  %p841_p4 = scmp.lt.s32.totalorder %s835_s7, %s835_s7 }
  0x2d   :  { %v940_v35 = vsel %vm57_vm0, %v52_v27, 0  ;;  %708 = vmatprep.subr.bf16.mxu1 %v929_v25  ;;  %744 = vmatprep.subr.bf16.mxu0 %v929_v25  ;;  %v944_v37 = vpack.c.bf16 %v78_v30, %v74_v29  ;;  %v946_v38 = vsub.f32 %v43_v13, %v74_v29  ;;  %v948_v39 = vsub.f32 %v45_v14, %v78_v30 }
  0x2e   :  { %v950_v41 = vpack.c.bf16 %v84_v32, %v80_v31  ;;  %v952_v42 = vsub.f32 %v48_v15, %v80_v31  ;;  %v954_v43 = vsub.f32 %v50_v20, %v84_v32  ;;  %v957_v44 = vand.u32 4294901760, %v940_v35  ;;  %p842_p5 = por %p841_p4, %p840_p3 }
  0x2f   :  { %v959_v45 = vpack.c.bf16 %v86_v34, %v82_v33  ;;  %v961_v46 = vsub.f32 %v47_v21, %v82_v33  ;;  %v59_v47 = vsel %vm57_vm0, %v51_v36, 0  ;;  %v156_v48 = vand.u32 4294901760, %v919_v17 }
  0x30   :  { %710 = vmatpush1.bf16.msra.mxu1 %v944_v37  ;;  %746 = vmatpush1.bf16.msra.mxu0 %v944_v37  ;;  %v967_v49 = vand.u32 4294901760, %v59_v47  ;;  %v168_v50 = vand.u32 4294901760, %v921_v18  ;;  %v55_v51 = vsel %vm53_vm1, %v38_v40, 0  ;;  %v162_v52 = vand.u32 4294901760, %v923_v19  ;;  %p843_p6 = pnand %p842_p5, %p836_p2 }
  0x31   :  { %712 = vmatprep.subr.bf16.mxu1 %v950_v41  ;;  %748 = vmatprep.subr.bf16.mxu0 %v950_v41  ;;  %v157_v53 = vsub.f32 %v919_v17, %v156_v48  ;;  %v974_v54 = vand.u32 4294901760, %v55_v51  ;;  %v174_v55 = vand.u32 4294901760, %v927_v24  ;;  %v180_v56 = vand.u32 4294901760, %v931_v26 }
  0x32   :  { %v978_v57 = vsub.f32 %v49_v22, %v86_v34  ;;  %v981_v58 = vsub.f32 %v59_v47, %v967_v49  ;;  %v169_v59 = vsub.f32 %v921_v18, %v168_v50  ;;  %v163_v60 = vsub.f32 %v923_v19, %v162_v52 }
  0x33   :  { %v158_v61 = vand.u32 4294901760, %v157_v53  ;;  %v751_v62 = vpack.c.bf16 %v168_v50, %v156_v48  ;;  %v986_v63 = vsub.f32 %v55_v51, %v974_v54  ;;  %v175_v1 = vsub.f32 %v927_v24, %v174_v55 }
  0x34   :  { %714 = vmatpush1.bf16.msra.mxu1 %v959_v45  ;;  %750 = vmatpush1.bf16.msra.mxu0 %v959_v45  ;;  %v170_v2 = vand.u32 4294901760, %v169_v59  ;;  %v164_v3 = vand.u32 4294901760, %v163_v60  ;;  %v181_v4 = vsub.f32 %v931_v26, %v180_v56  ;;  %v192_v5 = vand.u32 4294901760, %v935_v28 }
  0x35   :  { %89 = vmatprep.subr.mxu1 %v957_v44  ;;  %422 = vmatprep.subr.mxu0 %v957_v44  ;;  %v145_v6 = vand.u32 4294901760, %v986_v63  ;;  %v176_v7 = vand.u32 4294901760, %v175_v1  ;;  %v186_v8 = vand.u32 4294901760, %v946_v38  ;;  %v198_v9 = vand.u32 4294901760, %v948_v39 }
  0x36   :  { %v715_v10 = vpack.c.bf16 %v170_v2, %v158_v61  ;;  %v753_v11 = vpack.c.bf16 %v174_v55, %v162_v52  ;;  %v182_v12 = vand.u32 4294901760, %v181_v4  ;;  %v193_v13 = vsub.f32 %v935_v28, %v192_v5 }
  0x37   :  { %v146_v14 = vsub.f32 %v986_v63, %v145_v6  ;;  %v755_v15 = vpack.c.bf16 %v192_v5, %v180_v56  ;;  %v187_v20 = vsub.f32 %v946_v38, %v186_v8  ;;  %v199_v21 = vsub.f32 %v948_v39, %v198_v9 }
  0x38   :  { %91 = vmatpush1.msra.mxu1 %v967_v49  ;;  %424 = vmatpush1.msra.mxu0 %v967_v49  ;;  %v717_v22 = vpack.c.bf16 %v176_v7, %v164_v3  ;;  %v194_v27 = vand.u32 4294901760, %v193_v13  ;;  %v204_v29 = vand.u32 4294901760, %v952_v42  ;;  %v216_v30 = vand.u32 4294901760, %v954_v43 }
  0x39   :  { %716 = vmatprep.subr.bf16.mxu1 %v715_v10  ;;  %752 = vmatprep.subr.bf16.mxu0 %v751_v62  ;;  %v147_v31 = vand.u32 4294901760, %v146_v14  ;;  %v188_v32 = vand.u32 4294901760, %v187_v20  ;;  %v200_v33 = vand.u32 4294901760, %v199_v21  ;;  %v210_v34 = vand.u32 4294901760, %v961_v46 }
  0x3a   :  { %479 = vmatmul.mubr.f32.vlgmr.msra.gmra.mrb[0].mxu0 %v145_v6  ;;  %v719_v36 = vpack.c.bf16 %v194_v27, %v182_v12  ;;  %v757_v40 = vpack.c.bf16 %v198_v9, %v186_v8  ;;  %v205_v47 = vsub.f32 %v952_v42, %v204_v29  ;;  %v217_v48 = vsub.f32 %v954_v43, %v216_v30 }
  0x3b   :  { %148 = vmatmul.mubr.f32.vlgmr.msra.gmra.mrb[0].mxu1 %v147_v31  ;;  %754 = vmatpush1.bf16.msra.mxu0 %v753_v11  ;;  %v759_v50 = vpack.c.bf16 %v216_v30, %v204_v29  ;;  %v211_v51 = vsub.f32 %v961_v46, %v210_v34  ;;  %v222_v52 = vand.u32 4294901760, %v978_v57  ;;  %v227_v53 = vsub.f32 %v940_v35, %v957_v44 }
  0x3c   :  { %718 = vmatpush1.bf16.msra.mxu1 %v717_v22  ;;  %756 = vmatprep.subr.bf16.mxu0 %v755_v15  ;;  %v721_v55 = vpack.c.bf16 %v200_v33, %v188_v32  ;;  %v206_v56 = vand.u32 4294901760, %v205_v47  ;;  %v218_v59 = vand.u32 4294901760, %v217_v48  ;;  %v234_v60 = vand.u32 4294901760, %v981_v58 }
  0x3d   :  { %720 = vmatprep.subr.bf16.mxu1 %v719_v36  ;;  %v212_v61 = vand.u32 4294901760, %v211_v51  ;;  %v223_v62 = vsub.f32 %v978_v57, %v222_v52  ;;  %v228_v1 = vand.u32 4294901760, %v227_v53  ;;  %288 = vmatprep.mubr.f32.mxu1 %v867_v0  ;;  %v761_v35 = vpack.c.bf16 %v222_v52, %v210_v34 }
  0x3e   :  { %v723_v2 = vpack.c.bf16 %v218_v59, %v206_v56  ;;  %591 = vmatprep.mubr.f32.mxu0 %v867_v0  ;;  %v235_v5 = vsub.f32 %v981_v58, %v234_v60  ;;  %v727_v9 = vpack.c.bf16 %v921_v18, %v919_v17  ;;  %v729_v10 = vpack.c.bf16 %v927_v24, %v923_v19 }
  0x3f   :  { %758 = vmatpush1.bf16.msra.mxu0 %v757_v40  ;;  %v224_v3 = vand.u32 4294901760, %v223_v62  ;;  %v229_v4 = vsub.f32 %v227_v53, %v228_v1  ;;  %v731_v11 = vpack.c.bf16 %v935_v28, %v931_v26  ;;  %v733_v12 = vpack.c.bf16 %v948_v39, %v946_v38 }
  0x40   :  { %722 = vmatpush1.bf16.msra.mxu1 %v721_v55  ;;  %760 = vmatprep.subr.bf16.mxu0 %v759_v50  ;;  %v236_v8 = vand.u32 4294901760, %v235_v5  ;;  %v735_v17 = vpack.c.bf16 %v954_v43, %v952_v42 }
  0x41   :  { %724 = vmatprep.subr.bf16.mxu1 %v723_v2  ;;  %v725_v6 = vpack.c.bf16 %v224_v3, %v212_v61  ;;  %v230_v7 = vand.u32 4294901760, %v229_v4 }
  0x43   :  { %762 = vmatpush1.bf16.msra.mxu0 %v761_v35 }
  0x44   :  { %726 = vmatpush1.bf16.msra.mxu1 %v725_v6  ;;  %536 = vmatprep.subr.mxu0 %v228_v1 }
  0x45   :  { %231 = vmatprep.subr.mxu1 %v230_v7 }
  0x47   :  { %540 = vmatpush1.msra.mxu0 %v234_v60 }
  0x48   :  { %237 = vmatpush1.msra.mxu1 %v236_v8  ;;  %764 = vmatprep.subr.bf16.mxu0 %v917_v16  ;;  %v737_v16 = vpack.c.bf16 %v978_v57, %v961_v46 }
  0x49   :  { %728 = vmatprep.subr.bf16.mxu1 %v727_v9  ;;  %290 = vmatmul.mubr.f32.vlgmr.msra.gmra.mrb[0].mxu1 %v974_v54 }
  0x4a   :  { %730 = vmatpush1.bf16.msra.mxu1 %v729_v10  ;;  %593 = vmatmul.mubr.f32.vlgmr.msra.gmra.mrb[0].mxu0 %v974_v54 }
  0x4b   :  { %766 = vmatpush1.bf16.msra.mxu0 %v925_v23  ;;  %732 = vmatprep.subr.bf16.mxu1 %v731_v11 }
  0x4c   :  { %768 = vmatprep.subr.bf16.mxu0 %v929_v25  ;;  %388 = vmatprep.mubr.f32.mxu1 %v867_v0 }
  0x4d   :  { %677 = vmatprep.mubr.f32.mxu0 %v867_v0 }
  0x4e   :  { %734 = vmatpush1.bf16.msra.mxu1 %v733_v12 }
  0x4f   :  { %770 = vmatpush1.bf16.msra.mxu0 %v944_v37  ;;  %736 = vmatprep.subr.bf16.mxu1 %v735_v17 }
  0x50   :  { %772 = vmatprep.subr.bf16.mxu0 %v950_v41 }
  0x52   :  { %738 = vmatpush1.bf16.msra.mxu1 %v737_v16 }
  0x53   :  { %774 = vmatpush1.bf16.msra.mxu0 %v959_v45  ;;  %334 = vmatprep.subr.mxu1 %v227_v53 }
  0x54   :  { %624 = vmatprep.subr.mxu0 %v957_v44 }
  0x56   :  { %337 = vmatpush1.msra.mxu1 %v981_v58 }
  0x57   :  { %626 = vmatpush1.msra.mxu0 %v967_v49  ;;  %391 = vmatmul.mubr.f32.vlgmr.msra.gmra.mrb[0].mxu1 %v986_v63 }
  0x58   :  { %679 = vmatmul.mubr.f32.vlgmr.msra.gmra.mrb[0].mxu0 %v974_v54 }
 0x12a   :  { %v392_v0 = vpop.f32.mrb[0].mxu1 }
 0x12b   :  { %v680_v18 = vpop.f32.mrb[0].mxu0  ;;  %v394_v19 = vpop.f32.mrb[1].mxu1 }
 0x12c   :  { %v775_v23 = vadd.f32 %v680_v18, %v392_v0  ;;  %v682_v24 = vpop.f32.mrb[1].mxu0 }
 0x12d   :  { %v776_v25 = vadd.f32 %v682_v24, %v394_v19 }
 0x12e   :  { %685 = vst [vmem:[#allocation7] sm:$0xff] %v775_v23 }
 0x12f   :  { %686 = vst [vmem:[#allocation7 + $0x8] sm:$0xff] %v776_v25 }
 0x130   :  { %846 = shalt.err (!%p843_p6)
}
 0x131   :  { %s847_s10 = scalar_lea.hbm %s1059_s2, 256 }
 0x132   :  { %p848_p7 = scmp.ne.s32.totalorder %s1059_s2, %s847_s10  ;;  %p851_p8 = scmp.lt.u32.totalorder %s847_s10, %s1059_s2 }
 0x134   :  { %p853_p9 = pnand %p851_p8, %p848_p7 }
 0x136   :  { %856 = shalt.err (!%p853_p9)
}
 0x137   :  { %696 = dma.vmem_to_hbm [thread:$0]  %s694_s6, 256, %s1059_s2, [#allocation4]  }
 0x138   :  { %861 = dma.done.wait [#allocation4], 256  }
 0x139   :  { %862 = vsyncadd [#allocation4], 4294967040 }
 0x13a   :  { %700 = vsyncpa [#allocation3], 1 }
 0x13b   :  { %701 = vsyncpa [#allocation6], 1 }
 0x13c   :  { %702 = vsyncpa [#allocation4], 1 }

</bundles_post_ra>
